<compile_context>
chip_gen: v7x
topology: tpu7x:2x2x1
jax: 0.10.0
libtpu: 0.0.40
codegen_flags: <defaults>
</compile_context>

<pallas_src>
import jax
import jax.numpy as jnp
from jax.experimental import pallas as pl
from jax.experimental.pallas import tpu as pltpu


# --------------------------------------------------------------------------
# Fused Pallas kernel: one batch element per grid step
# --------------------------------------------------------------------------
def _attention_kernel(enc_ref, dec_ref, we_ref, wd_ref, b_ref, wf_ref, bf_ref,
                      awe_ref, alpha_ref):
    """Shapes seen inside the kernel (batch dim squeezed away):

    enc_ref:   (P, E)  encoder features for this batch element
    dec_ref:   (1, D)  decoder hidden state
    we_ref:    (E, A)  encoder_att weight (pre-transposed)
    wd_ref:    (D, A)  decoder_att weight (pre-transposed)
    b_ref:     (1, A)  encoder_att.bias + decoder_att.bias (folded)
    wf_ref:    (A, 1)  full_att weight (pre-transposed)
    bf_ref:    (1, 1)  full_att bias
    awe_ref:   (1, E)  OUT attention-weighted encoding
    alpha_ref: (P, 1)  OUT attention weights
    """
    enc = enc_ref[...]                                                  # (P, E)

    # encoder / decoder projections (MXU) + folded bias + ReLU
    a1 = jnp.dot(enc, we_ref[...], preferred_element_type=jnp.float32)  # (P, A)
    a2 = jnp.dot(dec_ref[...], wd_ref[...],
                 preferred_element_type=jnp.float32)                    # (1, A)
    h = jnp.maximum(a1 + a2 + b_ref[...], 0.0)                          # (P, A)

    # scoring linear -> (P, 1)
    s = jnp.dot(h, wf_ref[...], preferred_element_type=jnp.float32) + bf_ref[...]

    # numerically-stable softmax over the pixel axis (sublane reduction)
    m = jnp.max(s, axis=0, keepdims=True)                               # (1, 1)
    e = jnp.exp(s - m)                                                  # (P, 1)
    alpha = e / jnp.sum(e, axis=0, keepdims=True)                       # (P, 1)
    alpha_ref[...] = alpha.astype(alpha_ref.dtype)

    # attention-weighted encoding: sum_P encoded * alpha  -> (1, E)
    awe_ref[...] = jnp.sum(enc * alpha, axis=0,
                           keepdims=True).astype(awe_ref.dtype)


# --------------------------------------------------------------------------
# Wrapper around pallas_call
# --------------------------------------------------------------------------
def attention_forward(encoded, decoder_hidden, we, be, wd, bd, wf, bf):
    """encoded: (B, P, E)  decoder_hidden: (B, D)
    we: (E, A)  be: (A,)  wd: (D, A)  bd: (A,)  wf: (A, 1)  bf: (1,)
    Returns (attention_weighted_encoding (B, E), alpha (B, P))."""
    B, P, E = encoded.shape
    D = decoder_hidden.shape[-1]
    A = we.shape[-1]

    dec3 = decoder_hidden.reshape(B, 1, D)
    bias = (be + bd).reshape(1, A)          # fold the two projection biases
    bf2 = jnp.asarray(bf, jnp.float32).reshape(1, 1)

    awe3, alpha3 = pl.pallas_call(
        _attention_kernel,
        out_shape=(jax.ShapeDtypeStruct((B, 1, E), jnp.float32),
                   jax.ShapeDtypeStruct((B, P, 1), jnp.float32)),
        grid_spec=pltpu.PrefetchScalarGridSpec(
            num_scalar_prefetch=0,
            grid=(B,),
            in_specs=[
                pl.BlockSpec((None, P, E), lambda b: (b, 0, 0)),   # encoded
                pl.BlockSpec((None, 1, D), lambda b: (b, 0, 0)),   # dec hidden
                pl.BlockSpec((E, A), lambda b: (0, 0)),            # W_enc
                pl.BlockSpec((D, A), lambda b: (0, 0)),            # W_dec
                pl.BlockSpec((1, A), lambda b: (0, 0)),            # bias (folded)
                pl.BlockSpec((A, 1), lambda b: (0, 0)),            # w_full
                pl.BlockSpec((1, 1), lambda b: (0, 0)),            # b_full
            ],
            out_specs=[
                pl.BlockSpec((None, 1, E), lambda b: (b, 0, 0)),   # awe
                pl.BlockSpec((None, P, 1), lambda b: (b, 0, 0)),   # alpha
            ]),
        compiler_params=pltpu.CompilerParams(
            dimension_semantics=("parallel",)),
    )(encoded, dec3, we, wd, bias, wf, bf2)

    return awe3.reshape(B, E), alpha3.reshape(B, P)


# --------------------------------------------------------------------------
# Attention "module" (deterministic PyTorch-Linear-style parameters)
# --------------------------------------------------------------------------
class AttentionPallas:
    def __init__(self, attention_dim, encoder_dim, decoder_dim, *, key):
        k1, k2, k3, k4, k5, k6 = jax.random.split(key, 6)

        def linear(kw, kb, fan_in, fan_out):
            bound = 1.0 / jnp.sqrt(float(fan_in))
            w = jax.random.uniform(kw, (fan_in, fan_out), jnp.float32,
                                   -bound, bound)     # stored as (in, out)
            b = jax.random.uniform(kb, (fan_out,), jnp.float32, -bound, bound)
            return w, b

        self.we, self.be = linear(k1, k2, encoder_dim, attention_dim)
        self.wd, self.bd = linear(k3, k4, decoder_dim, attention_dim)
        self.wf, self.bf = linear(k5, k6, attention_dim, 1)

    def __call__(self, encoded, decoder_hidden):
        return attention_forward(encoded, decoder_hidden,
                                 self.we, self.be, self.wd, self.bd,
                                 self.wf, self.bf)


# --------------------------------------------------------------------------
# Pure-JAX reference (matches PyTorch forward exactly) for correctness check
# --------------------------------------------------------------------------
def reference_forward(m, encoded, decoder_hidden):
    a1 = encoded @ m.we + m.be                               # (B, P, A)
    a2 = decoder_hidden @ m.wd + m.bd                        # (B, A)
    full = jax.nn.relu(a1 + a2[:, None, :]) @ m.wf + m.bf    # (B, P, 1)
    full = full[..., 0]                                      # (B, P)
    alpha = jax.nn.softmax(full, axis=1)
    awe = jnp.sum(encoded * alpha[..., None], axis=1)        # (B, E)
    return awe, alpha


if __name__ == "__main__":
    key = jax.random.PRNGKey(0)
    kx, kh, kp = jax.random.split(key, 3)

    # batch=2, num_pixels=64, encoder_dim=32, decoder_dim=48, attention_dim=32
    B, P, E, D, A = 2, 64, 32, 48, 32
    encoded = jax.random.normal(kx, (B, P, E), jnp.float32)
    decoder_hidden = jax.random.normal(kh, (B, D), jnp.float32)

    attn = AttentionPallas(attention_dim=A, encoder_dim=E, decoder_dim=D,
                           key=kp)

    awe, alpha = jax.jit(attn.__call__)(encoded, decoder_hidden)
    awe = jax.block_until_ready(awe)
    alpha = jax.block_until_ready(alpha)

    awe_ref, alpha_ref = reference_forward(attn, encoded, decoder_hidden)

    assert awe.shape == (B, E), awe.shape
    assert alpha.shape == (B, P), alpha.shape
    assert jnp.allclose(alpha, alpha_ref, rtol=1e-4, atol=1e-4), \
        float(jnp.max(jnp.abs(alpha - alpha_ref)))
    assert jnp.allclose(awe, awe_ref, rtol=1e-4, atol=1e-4), \
        float(jnp.max(jnp.abs(awe - awe_ref)))

    print("KERNEL_OK")
</pallas_src>

<mosaic_0001>
module attributes {stable_mosaic.version = 11 : i64} {
  func.func @_attention_kernel(%arg0: i32, %arg1: memref<1x64x32xf32, #tpu.memory_space<vmem>>, %arg2: memref<1x1x48xf32, #tpu.memory_space<vmem>>, %arg3: memref<32x32xf32, #tpu.memory_space<vmem>>, %arg4: memref<48x32xf32, #tpu.memory_space<vmem>>, %arg5: memref<1x32xf32, #tpu.memory_space<vmem>>, %arg6: memref<32x1xf32, #tpu.memory_space<vmem>>, %arg7: memref<1x1xf32, #tpu.memory_space<vmem>>, %arg8: memref<1x1x32xf32, #tpu.memory_space<vmem>>, %arg9: memref<1x64x1xf32, #tpu.memory_space<vmem>>) attributes {dimension_semantics = [#tpu.dimension_semantics<parallel>], iteration_bounds = array<i64: 2>, scalar_prefetch = 0 : i64, scratch_operands = 0 : i64, tpu.core_type = #tpu.core_type<tc>, window_params = [{transform_indices = @transform_0, window_bounds = array<i64: 1, 64, 32>}, {transform_indices = @transform_1, window_bounds = array<i64: 1, 1, 48>}, {pipeline_mode = #tpu.pipeline_mode<synchronous>, transform_indices = @transform_2, window_bounds = array<i64: 32, 32>}, {pipeline_mode = #tpu.pipeline_mode<synchronous>, transform_indices = @transform_3, window_bounds = array<i64: 48, 32>}, {pipeline_mode = #tpu.pipeline_mode<synchronous>, transform_indices = @transform_4, window_bounds = array<i64: 1, 32>}, {pipeline_mode = #tpu.pipeline_mode<synchronous>, transform_indices = @transform_5, window_bounds = array<i64: 32, 1>}, {pipeline_mode = #tpu.pipeline_mode<synchronous>, transform_indices = @transform_6, window_bounds = array<i64: 1, 1>}, {transform_indices = @transform_7, window_bounds = array<i64: 1, 1, 32>}, {transform_indices = @transform_8, window_bounds = array<i64: 1, 64, 1>}]} {
    %c0 = arith.constant 0 : index
    %c0_0 = arith.constant 0 : index
    %c0_1 = arith.constant 0 : index
    %0 = vector.load %arg1[%c0, %c0_0, %c0_1] : memref<1x64x32xf32, #tpu.memory_space<vmem>>, vector<1x64x32xf32>
    %1 = vector.shape_cast %0 : vector<1x64x32xf32> to vector<64x32xf32>
    %c0_2 = arith.constant 0 : index
    %c0_3 = arith.constant 0 : index
    %2 = vector.load %arg3[%c0_2, %c0_3] : memref<32x32xf32, #tpu.memory_space<vmem>>, vector<32x32xf32>
    %cst = arith.constant dense<0.000000e+00> : vector<64x32xf32>
    %3 = tpu.matmul %1, %2, %cst {dimension_numbers = #tpu.dot_dimension_numbers<[1], [0], [0], [1], [0, 0, 1, 1], [], []>} : vector<64x32xf32>, vector<32x32xf32>, vector<64x32xf32> -> vector<64x32xf32>
    %c0_4 = arith.constant 0 : index
    %c0_5 = arith.constant 0 : index
    %c0_6 = arith.constant 0 : index
    %4 = vector.load %arg2[%c0_4, %c0_5, %c0_6] : memref<1x1x48xf32, #tpu.memory_space<vmem>>, vector<1x1x48xf32>
    %5 = vector.shape_cast %4 : vector<1x1x48xf32> to vector<1x48xf32>
    %c0_7 = arith.constant 0 : index
    %c0_8 = arith.constant 0 : index
    %6 = vector.load %arg4[%c0_7, %c0_8] : memref<48x32xf32, #tpu.memory_space<vmem>>, vector<48x32xf32>
    %cst_9 = arith.constant dense<0.000000e+00> : vector<1x32xf32>
    %7 = tpu.matmul %5, %6, %cst_9 {dimension_numbers = #tpu.dot_dimension_numbers<[1], [0], [0], [1], [0, 0, 1, 1], [], []>} : vector<1x48xf32>, vector<48x32xf32>, vector<1x32xf32> -> vector<1x32xf32>
    %8 = vector.broadcast %7 : vector<1x32xf32> to vector<64x32xf32>
    %9 = arith.addf %3, %8 : vector<64x32xf32>
    %c0_10 = arith.constant 0 : index
    %c0_11 = arith.constant 0 : index
    %10 = vector.load %arg5[%c0_10, %c0_11] : memref<1x32xf32, #tpu.memory_space<vmem>>, vector<1x32xf32>
    %11 = vector.broadcast %10 : vector<1x32xf32> to vector<64x32xf32>
    %12 = arith.addf %9, %11 : vector<64x32xf32>
    %cst_12 = arith.constant 0.000000e+00 : f32
    %13 = vector.broadcast %cst_12 : f32 to vector<64x32xf32>
    %14 = arith.maximumf %12, %13 : vector<64x32xf32>
    %c0_13 = arith.constant 0 : index
    %c0_14 = arith.constant 0 : index
    %15 = vector.load %arg6[%c0_13, %c0_14] : memref<32x1xf32, #tpu.memory_space<vmem>>, vector<32x1xf32>
    %cst_15 = arith.constant dense<0.000000e+00> : vector<64x1xf32>
    %16 = tpu.matmul %14, %15, %cst_15 {dimension_numbers = #tpu.dot_dimension_numbers<[1], [0], [0], [1], [0, 0, 1, 1], [], []>} : vector<64x32xf32>, vector<32x1xf32>, vector<64x1xf32> -> vector<64x1xf32>
    %c0_16 = arith.constant 0 : index
    %c0_17 = arith.constant 0 : index
    %17 = vector.load %arg7[%c0_16, %c0_17] : memref<1x1xf32, #tpu.memory_space<vmem>>, vector<1x1xf32>
    %18 = vector.broadcast %17 : vector<1x1xf32> to vector<64x1xf32>
    %19 = arith.addf %16, %18 : vector<64x1xf32>
    %cst_18 = arith.constant dense<0xFF800000> : vector<1xf32>
    %20 = vector.multi_reduction <maximumf>, %19, %cst_18 [0] : vector<64x1xf32> to vector<1xf32>
    %21 = vector.shape_cast %20 : vector<1xf32> to vector<1x1xf32>
    %22 = vector.broadcast %21 : vector<1x1xf32> to vector<64x1xf32>
    %23 = arith.subf %19, %22 : vector<64x1xf32>
    %24 = math.exp %23 : vector<64x1xf32>
    %cst_19 = arith.constant dense<0.000000e+00> : vector<1xf32>
    %25 = vector.multi_reduction <add>, %24, %cst_19 [0] : vector<64x1xf32> to vector<1xf32>
    %26 = vector.shape_cast %25 : vector<1xf32> to vector<1x1xf32>
    %27 = vector.broadcast %26 : vector<1x1xf32> to vector<64x1xf32>
    %28 = arith.divf %24, %27 : vector<64x1xf32>
    %c0_20 = arith.constant 0 : index
    %c0_21 = arith.constant 0 : index
    %c0_22 = arith.constant 0 : index
    %29 = vector.load %arg9[%c0_20, %c0_21, %c0_22] : memref<1x64x1xf32, #tpu.memory_space<vmem>>, vector<1x64x1xf32>
    %30 = vector.shape_cast %29 : vector<1x64x1xf32> to vector<64x1xf32>
    %31 = vector.shape_cast %28 : vector<64x1xf32> to vector<1x64x1xf32>
    tpu.vector_store %arg9[%c0_20, %c0_21, %c0_22], %31 {strides = array<i32>} : memref<1x64x1xf32, #tpu.memory_space<vmem>>, vector<1x64x1xf32>,
    %32 = vector.broadcast %28 : vector<64x1xf32> to vector<64x32xf32>
    %33 = arith.mulf %1, %32 : vector<64x32xf32>
    %cst_23 = arith.constant dense<0.000000e+00> : vector<32xf32>
    %34 = vector.multi_reduction <add>, %33, %cst_23 [0] : vector<64x32xf32> to vector<32xf32>
    %35 = vector.shape_cast %34 : vector<32xf32> to vector<1x32xf32>
    %c0_24 = arith.constant 0 : index
    %c0_25 = arith.constant 0 : index
    %c0_26 = arith.constant 0 : index
    %36 = vector.load %arg8[%c0_24, %c0_25, %c0_26] : memref<1x1x32xf32, #tpu.memory_space<vmem>>, vector<1x1x32xf32>
    %37 = vector.shape_cast %36 : vector<1x1x32xf32> to vector<1x32xf32>
    %38 = vector.shape_cast %35 : vector<1x32xf32> to vector<1x1x32xf32>
    tpu.vector_store %arg8[%c0_24, %c0_25, %c0_26], %38 {strides = array<i32>} : memref<1x1x32xf32, #tpu.memory_space<vmem>>, vector<1x1x32xf32>,
    return
  }
  func.func @transform_0(%arg0: i32) -> (i32, i32, i32) {
    %c0_i32 = arith.constant 0 : i32
    %c0_i32_0 = arith.constant 0 : i32
    %c0_i32_1 = arith.constant 0 : i32
    return %arg0, %c0_i32, %c0_i32_0 : i32, i32, i32
  }
  func.func @transform_1(%arg0: i32) -> (i32, i32, i32) {
    %c0_i32 = arith.constant 0 : i32
    %c0_i32_0 = arith.constant 0 : i32
    %c0_i32_1 = arith.constant 0 : i32
    return %arg0, %c0_i32, %c0_i32_0 : i32, i32, i32
  }
  func.func @transform_2(%arg0: i32) -> (i32, i32) {
    %c0_i32 = arith.constant 0 : i32
    %c0_i32_0 = arith.constant 0 : i32
    %c0_i32_1 = arith.constant 0 : i32
    return %c0_i32, %c0_i32_0 : i32, i32
  }
  func.func @transform_3(%arg0: i32) -> (i32, i32) {
    %c0_i32 = arith.constant 0 : i32
    %c0_i32_0 = arith.constant 0 : i32
    %c0_i32_1 = arith.constant 0 : i32
    return %c0_i32, %c0_i32_0 : i32, i32
  }
  func.func @transform_4(%arg0: i32) -> (i32, i32) {
    %c0_i32 = arith.constant 0 : i32
    %c0_i32_0 = arith.constant 0 : i32
    %c0_i32_1 = arith.constant 0 : i32
    return %c0_i32, %c0_i32_0 : i32, i32
  }
  func.func @transform_5(%arg0: i32) -> (i32, i32) {
    %c0_i32 = arith.constant 0 : i32
    %c0_i32_0 = arith.constant 0 : i32
    %c0_i32_1 = arith.constant 0 : i32
    return %c0_i32, %c0_i32_0 : i32, i32
  }
  func.func @transform_6(%arg0: i32) -> (i32, i32) {
    %c0_i32 = arith.constant 0 : i32
    %c0_i32_0 = arith.constant 0 : i32
    %c0_i32_1 = arith.constant 0 : i32
    return %c0_i32, %c0_i32_0 : i32, i32
  }
  func.func @transform_7(%arg0: i32) -> (i32, i32, i32) {
    %c0_i32 = arith.constant 0 : i32
    %c0_i32_0 = arith.constant 0 : i32
    %c0_i32_1 = arith.constant 0 : i32
    return %arg0, %c0_i32, %c0_i32_0 : i32, i32, i32
  }
  func.func @transform_8(%arg0: i32) -> (i32, i32, i32) {
    %c0_i32 = arith.constant 0 : i32
    %c0_i32_0 = arith.constant 0 : i32
    %c0_i32_1 = arith.constant 0 : i32
    return %arg0, %c0_i32, %c0_i32_0 : i32, i32, i32
  }
}

</mosaic_0001>

<bundles_post_ra>
// kernel: a_call__.1
= control target key start
LH: loop header
LB: loop body
LE: loop exit
PB: predicated region body
PF: predicated region fallthrough
CT: control target
= control target key end

     0   :  { %s1553_s0 = inlined_call_operand.vmem [shape: f32[2,64,32], index: 0, kind: input, shape index: {}]   ;;  %s1554_s1 = inlined_call_operand.vmem [shape: f32[2,1,48], index: 1, kind: input, shape index: {}]   ;;  %s1555_s2 = inlined_call_operand.vmem [shape: f32[32,32], index: 2, kind: input, shape index: {}]   ;;  %s1556_s3 = inlined_call_operand.vmem [shape: f32[48,32], index: 3, kind: input, shape index: {}]   ;;  %s1557_s4 = inlined_call_operand.vmem [shape: f32[1,32], index: 4, kind: input, shape index: {}]   ;;  %s1558_s5 = inlined_call_operand.vmem [shape: f32[32,1], index: 5, kind: input, shape index: {}]   ;;  %s1559_s6 = inlined_call_operand.<no memory space> [shape: f32[1,1], index: 6, kind: input, shape index: {}]   ;;  %s1560_s7 = inlined_call_operand.hbm [shape: f32[2,1,32], index: 7, kind: output, shape index: {0}]   ;;  %s1561_s8 = inlined_call_operand.vmem [shape: f32[2,64,1], index: 8, kind: output, shape index: {1}]  }
   0x1   :  { %v14_v0 = vstv %s1559_s6 }
   0x2   :  { %15 = vst [vmem:[#allocation2] sm:$0x1] %v14_v0 }
   0x3   :  { %16 = vsyncpa [#allocation4], 0 }
   0x4   :  { %18 = vsyncpa [#allocation4 + $0x1], 0  ;;  %s1314_s29 = smov 0   ;;  %s1316_s30 = smov 0  }
   0x5   :  { %s1318_s9 = smov 0   ;;  %s1320_s10 = smov 0  }
   0x6 LB: > { %s1335_s6 = sadd.s32 4294967295, %s1259_s10   ;;  %s987_s11 = sadd.s32 4294967294, %s1259_s10   ;;  %s1259_s10 = sphi %s1320_s10, %s1567_s10   ;;  %s1255_s9 = sphi %s1318_s9, %s1566_s9   ;;  %s1251_s30 = sphi %s1316_s30, %s1565_s30   ;;  %s1247_s29 = sphi %s1314_s29, %s1564_s29  }
   0x7   : > { %s1339_s12 = sadd.s32 1, %s1259_s10   ;;  %s188_s13 = sadd.s32 1, %s1255_s9 }
   0x8   : > { %s185_s14 = ssub.s32 %s1259_s10, %s1339_s12  ;;  %p198_p0 = scmp.ne.s32.totalorder %s1255_s9, %s1251_s30 }
   0x9   : > { %p186_p1 = scmp.eq.s32.totalorder %s185_s14, 0  ;;  %p199_p2 = scmp.eq.s32.totalorder %s1335_s6, 1 }
   0xa   : > { %p204_p3 = scmp.ne.s32.totalorder %s1251_s30, %s1247_s29  ;;  %p205_p4 = scmp.eq.s32.totalorder %s987_s11, 1 }
   0xb   : > { %s1350_s15 = scalar_select %p186_p1, %s1255_s9, %s188_s13  }
   0xc   : > { %p1352_p5 = por %p199_p2, %p198_p0  ;;  %p1356_p6 = por %p205_p4, %p204_p3 }
   0xd   : > { %p990_p7 = scmp.ge.s32.totalorder %s1259_s10, 1  ;;  %p278_p8 = scmp.lt.s32.totalorder %s1259_s10, 3 }
   0xf   : > { %p279_p9 = pnand %p990_p7, %p278_p8 }
  0x10   : > { %v345_v1 = vld [vmem:[%s1556_s3] sm:$0xff] (!%p279_p9)  ;;  %v346_v2 = vld [vmem:[%s1556_s3 + $0x8] sm:$0xff] (!%p279_p9)  ;;  %p319_p10 = scmp.lt.s32.totalorder (!%p279_p9), %s1335_s6, 1  ;;  %v1261_v4 = vmov (!%p279_p9), 0.0|0.0   ;;  %v347_v7 = vld [vmem:[%s1556_s3 + $0x10] sm:$0xff] (!%p279_p9)  ;;  %vm1262_vm0 = vmmov (!%p279_p9), 0   ;;  %v425_v33 = vlaneseq (!%p279_p9) }
  0x11   : > { %282 = sbr.rel (%p279_p9) target bundleno = 727 (0x2d7), region = 48  ;;  %v340_v3 = vld [vmem:[%s1555_s2] sm:$0xff] (!%p279_p9)  ;;  %1105 = vmatprep.subr.bf16.mxu0 (!%p279_p9), %v1261_v4  ;;  %v1106_v5 = vpack.c.bf16 (!%p279_p9), %v346_v2, %v345_v1  ;;  %v341_v6 = vld [vmem:[%s1555_s2 + $0x8] sm:$0xff] (!%p279_p9)  ;;  %v348_v8 = vld [vmem:[%s1556_s3 + $0x18] sm:$0xff] (!%p279_p9)  ;;  %v1263_v12 = vmov (!%p279_p9), 0.0   ;;  %vm429_vm1 = vcmask (!%p279_p9), 261120  }
  0x12   : > { %v1114_v9 = vpack.c.bf16 (!%p279_p9), %v341_v6, %v340_v3  ;;  %v342_v10 = vld [vmem:[%s1555_s2 + $0x10] sm:$0xff] (!%p279_p9)  ;;  %v343_v11 = vld [vmem:[%s1555_s2 + $0x18] sm:$0xff] (!%p279_p9)  ;;  %1062 = vmatprep.mubr.msk.f32.mxu0 (!%p279_p9), %vm1262_vm0, %v1263_v12  ;;  %v1109_v13 = vpack.c.bf16 (!%p279_p9), %v348_v8, %v347_v7  ;;  %v349_v15 = vld [vmem:[%s1556_s3 + $0x20] sm:$0xff] (!%p279_p9)  ;;  %vm351_vm2 = vcmask (!%p279_p9), 392192   ;;  %v426_v34 = vshrl.u32 (!%p279_p9), %v425_v33, 7 }
  0x13   : > { %1107 = vmatpush3.bf16.msra.mxu0 (!%p279_p9), %v1106_v5  ;;  %v1118_v14 = vpack.c.bf16 (!%p279_p9), %v343_v11, %v342_v10  ;;  %v350_v16 = vld [vmem:[%s1556_s3 + $0x28] sm:$0xff] (!%p279_p9)  ;;  %v582_v27 = vld [vmem:[%s1558_s5] sm:$0xff] (!%p279_p9)  ;;  %v584_v30 = vld [vmem:[%s1558_s5 + $0x10] sm:$0xff] (!%p279_p9)  ;;  %v1264_v8 = vmov (!%p279_p9), 0   ;;  %vm722_vm3 = vcmask (!%p279_p9), 7168   ;;  %vm875_vm4 = vcmask (!%p279_p9), 253952  }
  0x14   : > { %1115 = vmatprep.subr.bf16.mxu1 (!%p279_p9), %v1114_v9  ;;  %1108 = vmatprep.subr.bf16.mxu0 (!%p279_p9), %v1261_v4  ;;  %v1112_v18 = vpack.c.bf16 (!%p279_p9), %v350_v16, %v349_v15  ;;  %v583_v28 = vld [vmem:[%s1558_s5 + $0x8] sm:$0xff] (!%p279_p9)  ;;  %v585_v31 = vld [vmem:[%s1558_s5 + $0x18] sm:$0xff] (!%p279_p9)  ;;  %v427_v35 = vsub.s32 (!%p279_p9), 0, %v426_v34  ;;  %v1004_v42 = vld [vmem:[%s1557_s4] ss:$0 sm:$0xff] (!%p279_p9) }
  0x15   : > { %1117 = vmatpush3.bf16.msra.mxu1 (!%p279_p9), %v1114_v9  ;;  %v1122_v29 = vpack.c.bf16 (!%p279_p9), %v583_v28, %v582_v27  ;;  %v1126_v32 = vpack.c.bf16 (!%p279_p9), %v585_v31, %v584_v30  ;;  %1178 = vset.pattern.permute.xlu1 (!%p279_p9), %v1264_v8  ;;  %v1005_v11 = vld [vmem:[#allocation2] ss:$0 sm:$0xff] (!%p279_p9) }
  0x16   : > { %1119 = vmatprep.subr.bf16.mxu1 (!%p279_p9), %v1118_v14  ;;  %1177 = vset.pattern.permute.xlu0 (!%p279_p9), %v1264_v8 }
  0x17   : > { %1110 = vmatpush3.bf16.msra.mxu0 (!%p279_p9), %v1109_v13 }
  0x18   : > { %s1388_s20 = scalar_select %p319_p10, %s1335_s6, 1  ;;  %1111 = vmatprep.subr.bf16.mxu0 %v1261_v4 }
  0x19   : > { %1121 = vmatpush3.bf16.msra.mxu1 %v1118_v14 }
  0x1a   : > { %s1017_s21 = sshll.u32 %s1388_s20, 6  ;;  %s326_s14 = scalar_lea.vmem %s1554_s1, %s1388_s20  ;;  %1130 = vmatprep.subr.bf16.mxu1 %v1122_v29 }
  0x1b   : > { %s323_s28 = scalar_lea.vmem %s1553_s0, %s1017_s21  ;;  %1113 = vmatpush3.bf16.msra.mxu0 %v1112_v18  ;;  %v344_v21 = vld [vmem:[%s326_s14] sm:$0x1]  ;;  %s331_s18 = scalar_lea.vmem %s1561_s8, %s1017_s21 }
  0x1c   : > { %v1402_v17 = vld [vmem:[%s323_s28] sm:$0xff]  ;;  %v1410_v19 = vld [vmem:[%s323_s28 + $0x8] sm:$0xff]  ;;  %v1412_v20 = vld [vmem:[%s323_s28 + $0x10] sm:$0xff]  ;;  %1123 = vmatprep.subr.bf16.mxu0 %v1122_v29  ;;  %s310_s20 = sand.u32 1, %s1251_s30   ;;  %s1014_s21 = sshll.u32 %s1335_s6, 4 }
  0x1d   : > { %1073 = vmatprep.mubr.msk.f32.mxu1 %vm429_vm1, %v1402_v17  ;;  %v1418_v22 = vld [vmem:[%s323_s28 + $0x18] sm:$0xff]  ;;  %v1420_v23 = vld [vmem:[%s323_s28 + $0x20] sm:$0xff]  ;;  %v1426_v24 = vld [vmem:[%s323_s28 + $0x28] sm:$0xff]  ;;  %s311_s19 = scalar_lea.vmem [#allocation3], %s310_s20  ;;  %s1511_s25 = scalar_lea.hbm %s1560_s7, %s1014_s21 }
  0x1e   : > { %1074 = vmatmul.mubr.msk.f32.vlgmr.msra.gmra.mrb[0].mxu1 %vm429_vm1, %v1410_v19  ;;  %1063 = vmatmul.mubr.msk.f32.vlgmr.msra.gmra.mrb[0].mxu0 %vm351_vm2, %v344_v21  ;;  %v1428_v25 = vld [vmem:[%s323_s28 + $0x30] sm:$0xff]  ;;  %v1434_v26 = vld [vmem:[%s323_s28 + $0x38] sm:$0xff]  ;;  %s895_s22 = sshll.u32 %s311_s19, 4  ;;  %s878_s26 = scalar_lea.sflag [#allocation4], %s310_s20  ;;  %s1513_s22 = int_to_ptr.vmem [resolvable:$true] %s895_s22 }
  0x1f   : > { %1076 = vmatprep.mubr.msk.f32.mxu1 %vm429_vm1, %v1412_v20  ;;  %1132 = vmatpush3.bf16.msra.mxu1 %v1122_v29  ;;  %s1197_s27 = scalar_lea.vmem %s1513_s22, 16  ;;  %s1265_s6 = smov [#allocation3]  }
  0x20   : > { %1125 = vmatpush3.bf16.msra.mxu0 %v1122_v29  ;;  %1131 = vmatprep.subr.bf16.mxu1 %v1126_v32  ;;  %p1198_p11 = scmp.ne.s32.totalorder %s1513_s22, %s1197_s27  ;;  %s1201_s28 = sshll.u32 %s1265_s6, 4  ;;  %s1202_s28 = int_to_ptr.vmem [resolvable:$false] %s1201_s28 }
  0x21   : > { %1127 = vmatprep.subr.bf16.mxu0 %v1126_v32  ;;  %s1203_s11 = scalar_lea.vmem %s1202_s28, 32  ;;  %p1204_p0 = scmp.lt.s32.totalorder %s1513_s22, %s1202_s28 }
  0x22   : > { %1077 = vmatmul.mubr.msk.f32.gmra.mrb[2].mxu1 %vm429_vm1, %v1418_v22  ;;  %p1199_p12 = pnand %p1198_p11, %p1352_p5  ;;  %p1205_p1 = scmp.lt.s32.totalorder %s1203_s11, %s1197_s27 }
  0x23   : > { %1079 = vmatprep.mubr.msk.f32.mxu1 %vm429_vm1, %v1420_v23  ;;  %1133 = vmatpush3.bf16.msra.mxu1 %v1126_v32 }
  0x24   : > { %1129 = vmatpush3.bf16.msra.mxu0 %v1126_v32  ;;  %p1200_p13 = pneg %p1199_p12  ;;  %p1206_p2 = por %p1205_p1, %p1204_p0 }
  0x26   : > { %1080 = vmatmul.mubr.msk.f32.gmra.mrb[4].mxu1 %vm429_vm1, %v1426_v24  ;;  %p1207_p3 = pnand %p1206_p2, %p1200_p13 }
  0x27   : > { %1082 = vmatprep.mubr.msk.f32.mxu1 %vm429_vm1, %v1428_v25 }
  0x2a   : > { %1083 = vmatmul.mubr.msk.f32.gmra.mrb[6].mxu1 %vm429_vm1, %v1434_v26 }
  0xf1   : > { %v1075_v36 = vpop.f32.mrb[0].mxu1  ;;  %v421_v38 = vpop.f32.mrb[0].mxu0 }
  0xf2   : > { %v520_v37 = vpop.f32.mrb[1].mxu1  ;;  %v428_v39 = vrot.slane %v421_v38, %v427_v35  ;;  %v1064_v40 = vpop.f32.mrb[1].mxu0 }
  0xf4   : > { %v521_v45 = vadd.f32 %v520_v37, %v428_v39  ;;  %v526_v46 = vadd.f32 %v1075_v36, %v428_v39 }
  0xf5   : > { %v1078_v41 = vpop.f32.mrb[2].mxu1 }
  0xf6   : > { %v536_v43 = vadd.f32 %v1078_v41, %v428_v39  ;;  %v530_v44 = vpop.f32.mrb[3].mxu1  ;;  %v566_v48 = vadd.f32 %v1004_v42, %v521_v45  ;;  %v567_v49 = vadd.f32 %v1004_v42, %v526_v46 }
  0xf7   : > { %v531_v47 = vadd.f32 %v530_v44, %v428_v39 }
  0xf8   : > { %v574_v54 = vmax.f32 %v566_v48, 0.0  ;;  %v575_v55 = vmax.f32 %v567_v49, 0.0  ;;  %v569_v56 = vadd.f32 %v1004_v42, %v536_v43 }
  0xf9   : > { %v568_v50 = vadd.f32 %v1004_v42, %v531_v47  ;;  %v1081_v51 = vpop.f32.mrb[4].mxu1 }
  0xfa   : > { %v546_v52 = vadd.f32 %v1081_v51, %v428_v39  ;;  %v540_v53 = vpop.f32.mrb[5].mxu1  ;;  %1093 = vmatprep.mubr.msk.f32.mxu0 %vm429_vm1, %v574_v54  ;;  %v577_v63 = vmax.f32 %v569_v56, 0.0 }
  0xfb   : > { %v541_v57 = vadd.f32 %v540_v53, %v428_v39  ;;  %v576_v58 = vmax.f32 %v568_v50, 0.0  ;;  %1094 = vmatmul.mubr.msk.f32.vlgmr.msra.gmra.mrb[2].mxu0 %vm429_vm1, %v575_v55 }
  0xfc   : > { %v571_v0 = vadd.f32 %v1004_v42, %v546_v52 }
  0xfd   : > { %v570_v59 = vadd.f32 %v1004_v42, %v541_v57  ;;  %v1084_v60 = vpop.f32.mrb[6].mxu1  ;;  %1096 = vmatprep.mubr.msk.f32.mxu0 %vm429_vm1, %v576_v58 }
  0xfe   : > { %v556_v61 = vadd.f32 %v1084_v60, %v428_v39  ;;  %v550_v62 = vpop.f32.mrb[7].mxu1  ;;  %v579_v5 = vmax.f32 %v571_v0, 0.0 }
  0xff   : > { %v551_v1 = vadd.f32 %v550_v62, %v428_v39  ;;  %v578_v2 = vmax.f32 %v570_v59, 0.0  ;;  %1097 = vmatmul.mubr.msk.f32.gmra.mrb[4].mxu0 %vm429_vm1, %v577_v63 }
 0x100   : > { %v573_v3 = vadd.f32 %v1004_v42, %v556_v61 }
 0x101   : > { %v572_v4 = vadd.f32 %v1004_v42, %v551_v1  ;;  %1099 = vmatprep.mubr.msk.f32.mxu0 %vm429_vm1, %v578_v2 }
 0x102   : > { %v581_v7 = vmax.f32 %v573_v3, 0.0 }
 0x103   : > { %v580_v6 = vmax.f32 %v572_v4, 0.0  ;;  %1100 = vmatmul.mubr.msk.f32.gmra.mrb[6].mxu0 %vm429_vm1, %v579_v5 }
 0x105   : > { %1102 = vmatprep.mubr.msk.f32.mxu1 %vm429_vm1, %v580_v6 }
 0x106   : > { %1103 = vmatmul.mubr.msk.f32.vlgmr.msra.gmra.mrb[8].mxu1 %vm429_vm1, %v581_v7 }
 0x1ce   : > { %v1095_v9 = vpop.f32.mrb[2].mxu0 }
 0x1cf   : > { %v683_v10 = vpop.f32.mrb[3].mxu0  ;;  %v689_v14 = vadd.f32 %v1095_v9, %v1005_v11 }
 0x1d0   : > { %v684_v15 = vadd.f32 %v1005_v11, %v683_v10 }
 0x1d1   : > { %v724_v33 = vsel %vm722_vm3, %v689_v14, -inf }
 0x1d2   : > { %v1098_v12 = vpop.f32.mrb[4].mxu0  ;;  %v723_v34 = vsel %vm722_vm3, %v684_v15, -inf }
 0x1d3   : > { %v693_v13 = vpop.f32.mrb[5].mxu0  ;;  %v699_v16 = vadd.f32 %v1098_v12, %v1005_v11 }
 0x1d4   : > { %v694_v21 = vadd.f32 %v1005_v11, %v693_v13 }
 0x1d5   : > { %v726_v37 = vsel %vm722_vm3, %v699_v16, -inf }
 0x1d6   : > { %v1101_v18 = vpop.f32.mrb[6].mxu0  ;;  %v725_v41 = vsel %vm722_vm3, %v694_v21, -inf }
 0x1d7   : > { %v709_v27 = vadd.f32 %v1101_v18, %v1005_v11  ;;  %v703_v29 = vpop.f32.mrb[7].mxu0 }
 0x1d8   : > { %v704_v31 = vadd.f32 %v1005_v11, %v703_v29 }
 0x1d9   : > { %v1104_v28 = vpop.f32.mrb[8].mxu1  ;;  %v729_v35 = vsel %vm722_vm3, %v709_v27, -inf }
 0x1da   : > { %v719_v30 = vadd.f32 %v1104_v28, %v1005_v11  ;;  %v713_v32 = vpop.f32.mrb[9].mxu1  ;;  %v730_v38 = vmax.f32 %v724_v33, %v729_v35  ;;  %v727_v40 = vsel %vm722_vm3, %v704_v31, -inf }
 0x1db   : > { %v714_v36 = vadd.f32 %v1005_v11, %v713_v32  ;;  %v728_v43 = vmax.f32 %v723_v34, %v727_v40 }
 0x1dc   : > { %v733_v39 = vsel %vm722_vm3, %v719_v30, -inf }
 0x1dd   : > { %v734_v42 = vmax.f32 %v726_v37, %v733_v39  ;;  %v731_v44 = vsel %vm722_vm3, %v714_v36, -inf  ;;  %v735_v46 = vmax.f32 %v728_v43, %v730_v38 }
 0x1de   : > { %v732_v45 = vmax.f32 %v725_v41, %v731_v44 }
 0x1e0   : > { %v736_v47 = vmax.f32 %v732_v45, %v734_v42 }
 0x1e2   : > { %v737_v48 = vmax.f32 %v735_v46, %v736_v47 }
 0x1e4   : > { %v738_v49 = vrot.slane %v737_v48, 4 }
 0x1e6   : > { %v739_v50 = vmax.f32 %v737_v48, %v738_v49 }
 0x1e8   : > { %v740_v51 = vrot.slane %v739_v50, 2 }
 0x1ea   : > { %v741_v52 = vmax.f32 %v739_v50, %v740_v51 }
 0x1ec   : > { %v742_v53 = vrot.slane %v741_v52, 1 }
 0x1ee   : > { %v743_v54 = vmax.f32 %v741_v52, %v742_v53 }
 0x1f0   : > { %v750_v55 = vsub.f32 %v714_v36, %v743_v54  ;;  %v751_v56 = vsub.f32 %v719_v30, %v743_v54  ;;  %v744_v57 = vsub.f32 %v684_v15, %v743_v54  ;;  %v745_v58 = vsub.f32 %v689_v14, %v743_v54 }
 0x1f1   : > { %v746_v59 = vsub.f32 %v694_v21, %v743_v54  ;;  %v747_v60 = vsub.f32 %v699_v16, %v743_v54  ;;  %v748_v61 = vsub.f32 %v704_v31, %v743_v54  ;;  %v749_v62 = vsub.f32 %v709_v27, %v743_v54 }
 0x1f2   : > { %v752_v63 = vmul.f32 1.442695, %v744_v57  ;;  %v754_v0 = vmul.f32 1.442695, %v745_v58  ;;  %v764_v5 = vmul.f32 1.442695, %v750_v55 }
 0x1f3   : > { %v756_v1 = vmul.f32 1.442695, %v746_v59  ;;  %v758_v2 = vmul.f32 1.442695, %v747_v60  ;;  %v760_v3 = vmul.f32 1.442695, %v748_v61 }
 0x1f4   : > { %1179 = vpow2.f32 %v752_v63  ;;  %v762_v4 = vmul.f32 1.442695, %v749_v62  ;;  %v766_v6 = vmul.f32 1.442695, %v751_v56 }
 0x1f5   : > { %1181 = vpow2.f32 %v754_v0 }
 0x1f6   : > { %1183 = vpow2.f32 %v756_v1 }
 0x1f7   : > { %1185 = vpow2.f32 %v758_v2 }
 0x1f8   : > { %1187 = vpow2.f32 %v760_v3 }
 0x1f9   : > { %1189 = vpow2.f32 %v762_v4 }
 0x1fa   : > { %1191 = vpow2.f32 %v764_v5 }
 0x1fb   : > { %1193 = vpow2.f32 %v766_v6 }
 0x1fe   : > { %v1180_v7 = vpop.eup %1179 }
 0x1ff   : > { %v1182_v8 = vpop.eup %1181  ;;  %v768_v9 = vsel %vm722_vm3, %v1180_v7, 0.0 }
 0x200   : > { %v1184_v10 = vpop.eup %1183  ;;  %v769_v11 = vsel %vm722_vm3, %v1182_v8, 0.0 }
 0x201   : > { %v1186_v12 = vpop.eup %1185  ;;  %v770_v13 = vadd.f32 %v769_v11, %v768_v9  ;;  %v771_v14 = vsel %vm722_vm3, %v1184_v10, 0.0 }
 0x202   : > { %v1188_v15 = vpop.eup %1187  ;;  %v773_v18 = vsel %vm722_vm3, %v1186_v12, 0.0 }
 0x203   : > { %v772_v16 = vadd.f32 %v771_v14, %v770_v13  ;;  %v1190_v21 = vpop.eup %1189  ;;  %v775_v28 = vsel %vm722_vm3, %v1188_v15, 0.0 }
 0x204   : > { %v1192_v29 = vpop.eup %1191  ;;  %v777_v31 = vsel %vm722_vm3, %v1190_v21, 0.0 }
 0x205   : > { %v774_v27 = vadd.f32 %v773_v18, %v772_v16  ;;  %v1194_v32 = vpop.eup %1193  ;;  %v779_v34 = vsel %vm722_vm3, %v1192_v29, 0.0 }
 0x206   : > { %v781_v36 = vsel %vm722_vm3, %v1194_v32, 0.0 }
 0x207   : > { %v776_v30 = vadd.f32 %v775_v28, %v774_v27 }
 0x209   : > { %v778_v33 = vadd.f32 %v777_v31, %v776_v30 }
 0x20b   : > { %v780_v35 = vadd.f32 %v779_v34, %v778_v33 }
 0x20d   : > { %v782_v37 = vadd.f32 %v781_v36, %v780_v35 }
 0x20f   : > { %v783_v38 = vrot.slane %v782_v37, 4 }
 0x211   : > { %v784_v39 = vadd.f32 %v783_v38, %v782_v37 }
 0x213   : > { %v785_v40 = vrot.slane %v784_v39, 2 }
 0x215   : > { %v786_v41 = vadd.f32 %v785_v40, %v784_v39 }
 0x217   : > { %v787_v42 = vrot.slane %v786_v41, 1 }
 0x219   : > { %v788_v43 = vadd.f32 %v787_v42, %v786_v41 }
 0x21b   : > { %1195 = vrcp.f32 %v788_v43 }
 0x225   : > { %v1196_v44 = vpop.eup %1195 }
 0x226   : > { %v792_v45 = vmul.f32 %v1196_v44, %v1184_v10  ;;  %v790_v46 = vmul.f32 %v1196_v44, %v1180_v7  ;;  %v793_v47 = vmul.f32 %v1196_v44, %v1186_v12  ;;  %v791_v48 = vmul.f32 %v1196_v44, %v1182_v8 }
 0x227   : > { %v795_v49 = vmul.f32 %v1196_v44, %v1190_v21  ;;  %v794_v50 = vmul.f32 %v1196_v44, %v1188_v15  ;;  %v797_v51 = vmul.f32 %v1196_v44, %v1194_v32  ;;  %v796_v52 = vmul.f32 %v1196_v44, %v1192_v29 }
 0x228   : > { %818 = vperm.xlu1 %1178, %v792_v45   ;;  %800 = vst.msk [vmem:[%s331_s18 + $0x10] sm:$0xff] %vm722_vm3, %v792_v45  ;;  %808 = vperm.xlu0 %1177, %v790_v46   ;;  %798 = vst.msk [vmem:[%s331_s18] sm:$0xff] %vm722_vm3, %v790_v46 }
 0x229   : > { %801 = vst.msk [vmem:[%s331_s18 + $0x18] sm:$0xff] %vm722_vm3, %v793_v47  ;;  %799 = vst.msk [vmem:[%s331_s18 + $0x8] sm:$0xff] %vm722_vm3, %v791_v48 }
 0x22a   : > { %803 = vst.msk [vmem:[%s331_s18 + $0x28] sm:$0xff] %vm722_vm3, %v795_v49  ;;  %802 = vst.msk [vmem:[%s331_s18 + $0x20] sm:$0xff] %vm722_vm3, %v794_v50 }
 0x22b   : > { %805 = vst.msk [vmem:[%s331_s18 + $0x38] sm:$0xff] %vm722_vm3, %v797_v51  ;;  %804 = vst.msk [vmem:[%s331_s18 + $0x30] sm:$0xff] %vm722_vm3, %v796_v52 }
 0x22c   : > { %823 = vperm.xlu1 %1178, %v793_v47   ;;  %813 = vperm.xlu0 %1177, %v791_v48  }
 0x230   : > { %833 = vperm.xlu1 %1178, %v795_v49   ;;  %828 = vperm.xlu0 %1177, %v794_v50  }
 0x234   : > { %843 = vperm.xlu1 %1178, %v797_v51   ;;  %838 = vperm.xlu0 %1177, %v796_v52  }
 0x2a7   : > { %v819_v53 = vpop.permute.xlu1 %818  ;;  %v809_v54 = vpop.permute.xlu0 %808 }
 0x2a8   : > { %v846_v55 = vmul.f32 %v809_v54, %v1402_v17  ;;  %v848_v58 = vmul.f32 %v819_v53, %v1412_v20 }
 0x2aa   : > { %v854_v60 = vsel %vm429_vm1, %v846_v55, 0.0  ;;  %v857_v2 = vsel %vm429_vm1, %v848_v58, 0.0 }
 0x2ab   : > { %v824_v56 = vpop.permute.xlu1 %823  ;;  %v814_v57 = vpop.permute.xlu0 %813 }
 0x2ac   : > { %v847_v59 = vmul.f32 %v814_v57, %v1410_v19  ;;  %v849_v61 = vmul.f32 %v824_v56, %v1418_v22 }
 0x2ae   : > { %v855_v62 = vsel %vm429_vm1, %v847_v59, 0.0  ;;  %v859_v4 = vsel %vm429_vm1, %v849_v61, 0.0 }
 0x2af   : > { %v856_v63 = vadd.f32 %v855_v62, %v854_v60  ;;  %v834_v0 = vpop.permute.xlu1 %833  ;;  %v829_v1 = vpop.permute.xlu0 %828 }
 0x2b0   : > { %v850_v3 = vmul.f32 %v829_v1, %v1420_v23  ;;  %v851_v20 = vmul.f32 %v834_v0, %v1426_v24 }
 0x2b1   : > { %v858_v17 = vadd.f32 %v857_v2, %v856_v63 }
 0x2b2   : > { %v861_v22 = vsel %vm429_vm1, %v850_v3, 0.0  ;;  %v863_v9 = vsel %vm429_vm1, %v851_v20, 0.0 }
 0x2b3   : > { %v860_v19 = vadd.f32 %v859_v4, %v858_v17  ;;  %v844_v5 = vpop.permute.xlu1 %843  ;;  %v839_v6 = vpop.permute.xlu0 %838 }
 0x2b4   : > { %v852_v7 = vmul.f32 %v839_v6, %v1428_v25  ;;  %v853_v10 = vmul.f32 %v844_v5, %v1434_v26 }
 0x2b5   : > { %v862_v8 = vadd.f32 %v861_v22, %v860_v19 }
 0x2b6   : > { %v865_v11 = vsel %vm429_vm1, %v852_v7, 0.0  ;;  %v867_v13 = vsel %vm429_vm1, %v853_v10, 0.0 }
 0x2b7   : > { %v864_v23 = vadd.f32 %v863_v9, %v862_v8 }
 0x2b9   : > { %v866_v12 = vadd.f32 %v865_v11, %v864_v23 }
 0x2bb   : > { %v868_v24 = vadd.f32 %v867_v13, %v866_v12 }
 0x2bd   : > { %v869_v14 = vrot.slane %v868_v24, 4 }
 0x2bf   : > { %v870_v15 = vadd.f32 %v869_v14, %v868_v24 }
 0x2c1   : > { %v871_v16 = vrot.slane %v870_v15, 2 }
 0x2c3   : > { %v872_v18 = vadd.f32 %v871_v16, %v870_v15 }
 0x2c5   : > { %v873_v25 = vrot.slane %v872_v18, 1 }
 0x2c7   : > { %v874_v21 = vadd.f32 %v873_v25, %v872_v18 }
 0x2c9   : > { %876 = vst.msk [vmem:[%s311_s19] sm:$0x1] %vm875_vm4, %v874_v21 }
 0x2ca   : > { %1210 = shalt.err (!%p1207_p3)
}
 0x2cb   : > { %s1211_s13 = scalar_lea.hbm %s1511_s25, 16  ;;  %s1215_s20 = scalar_lea.hbm %s1560_s7, 32 }
 0x2cc   : > { %p1212_p4 = scmp.ne.s32.totalorder %s1511_s25, %s1211_s13  ;;  %p1216_p9 = scmp.lt.u32.totalorder %s1511_s25, %s1560_s7 }
 0x2cd   : > { %p1217_p10 = scmp.lt.u32.totalorder %s1215_s20, %s1211_s13  ;;  %p1219_p12 = scmp.lt.u32.totalorder %s1211_s13, %s1511_s25 }
 0x2ce   : > { %p1213_p7 = pnand %p1212_p4, %p1352_p5 }
 0x2cf   : > { %p1218_p11 = por %p1217_p10, %p1216_p9 }
 0x2d0   : > { %p1214_p8 = pneg %p1213_p7 }
 0x2d1   : > { %p1220_p13 = por %p1219_p12, %p1218_p11 }
 0x2d3   : > { %p1221_p0 = pnand %p1220_p13, %p1214_p8 }
 0x2d5   : > { %1224 = shalt.err (!%p1221_p0)
}
 0x2d6   : > { %1134 = dma.vmem_to_hbm [thread:$0]  (%p1352_p5), %s1513_s22, 16, %s1511_s25, %s878_s26  }
 0x2d7 PF: > { %p1140_p1 = scmp.ge.s32.totalorder %s1259_s10, 2  ;;  %s910_s23 = sand.u32 1, %s1247_s29  }
 0x2d8   : > { %s911_s24 = scalar_lea.sflag [#allocation4], %s910_s23 }
 0x2d9   : > { %p1137_p2 = pnand %p1140_p1, %p1356_p6 }
 0x2db   : > { %1242 = dma.done.wait (!%p1137_p2), %s911_s24, 16  }
 0x2dc   : > { %1244 = vsyncadd (!%p1137_p2), %s911_s24, 4294967280  ;;  %p21_p3 = scmp.ge.s32.totalorder %s1339_s12, 4   ;;  %s1564_s29 = smov %s1251_s30 }
 0x2dd   : > { %s1565_s30 = smov %s1255_s9  ;;  %s1566_s9 = smov %s1350_s15 }
 0x2de   : > { %s1567_s10 = smov %s1339_s12  ;;  %23 = sbr.rel (!%p21_p3) target bundleno = 6 (0x6), region = 98 }
 0x2e5   :  { %923 = vsyncpa [#allocation4], 1 }
 0x2e6   :  { %925 = vsyncpa [#allocation4 + $0x1], 1 }

</bundles_post_ra>
